<compile_context>
chip_gen: v6e
topology: v6e:2x2x1
jax: 0.10.0
libtpu: 0.0.40
codegen_flags: <defaults>
</compile_context>

<pallas_src>
import functools

import jax
import jax.numpy as jnp
from jax.experimental import pallas as pl
from jax.experimental.pallas import tpu as pltpu

MIN_VALUE = -0.5   # module's `min_value` constructor arg
N_PAD = 128        # lane-dense output width (real outputs = first 64 cols)
M_MULT = 8         # f32 sublane count
M_TILE = 256       # M tile once the batch is large enough to grid


def _round_up(a, b):
    return ((a + b - 1) // b) * b


# ---------------------------------------------------------------------------
# Pallas kernel: fused matmul + bias + clamp_min + clamp_max
# ---------------------------------------------------------------------------
def _fused_affine_clamp_kernel(x_ref, w_ref, b_ref, o_ref, *, min_value):
    y = jnp.dot(x_ref[...], w_ref[...], preferred_element_type=jnp.float32)
    y = y + b_ref[...]
    y = jnp.maximum(y, min_value)   # torch.clamp_min(v3, min_value)
    y = jnp.minimum(y, 0.0)         # torch.clamp_max(v4, 0)
    o_ref[...] = y


@functools.lru_cache(maxsize=None)
def _build_pallas_call(M, K, N, tm, min_value):
    """Build the pallas_call callable exactly once per static shape/config."""
    kern = functools.partial(_fused_affine_clamp_kernel, min_value=min_value)
    return pl.pallas_call(
        kern,
        out_shape=jax.ShapeDtypeStruct((M, N), jnp.float32),
        grid=(M // tm,),
        in_specs=[
            pl.BlockSpec((tm, K), lambda i: (i, 0)),
            pl.BlockSpec((K, N), lambda i: (0, 0)),
            pl.BlockSpec((1, N), lambda i: (0, 0)),
        ],
        out_specs=pl.BlockSpec((tm, N), lambda i: (i, 0)),
        compiler_params=pltpu.CompilerParams(
            dimension_semantics=("parallel",)),
    )


# ---------------------------------------------------------------------------
# Trace-time weight folding: conv(1x1, pad=1) + flatten(1) + linear -> affine
# ---------------------------------------------------------------------------
def fold_conv_into_linear(conv_w, conv_b, lin_w, lin_b, H=2, W=2, n_pad=N_PAD):
    """Return (w_eff (Cin*H*W, n_pad), b_eff (1, n_pad), n_out) such that
    lin(flatten(conv(x)))[:, :n_out] == (x.reshape(B,-1) @ w_eff + b_eff)[:, :n_out]."""
    Hp, Wp = H + 2, W + 2
    Cout, Cin = conv_w.shape[0], conv_w.shape[1]
    Nout = lin_w.shape[0]

    wc = conv_w[:, :, 0, 0]                       # (Cout, Cin)
    lw = lin_w.reshape(Nout, Cout, Hp, Wp)        # lin_w over NCHW flatten order

    # Only interior (non-padded) positions carry an x-dependent term.
    lw_int = lw[:, :, 1:1 + H, 1:1 + W]           # (Nout, Cout, H, W)
    w_eff = jnp.einsum("nchw,ci->nihw", lw_int, wc)      # (Nout, Cin, H, W)
    w_eff = w_eff.reshape(Nout, Cin * H * W).T           # (12, Nout)

    # Every spatial position (padded or not) feeds conv_b through lin_w.
    b_eff = lin_b + jnp.einsum("nchw,c->n", lw, conv_b)  # (Nout,)

    # Zero-pad the output dimension to a full 128-lane width.
    K = w_eff.shape[0]
    w_pad = jnp.zeros((K, n_pad), jnp.float32).at[:, :Nout].set(w_eff)
    b_pad = jnp.zeros((1, n_pad), jnp.float32).at[:, :Nout].set(b_eff)
    return w_pad, b_pad, Nout


# ---------------------------------------------------------------------------
# Model forward factory: fold once, return a jitted single-pallas_call forward
# ---------------------------------------------------------------------------
def make_model_forward(conv_w, conv_b, lin_w, lin_b, min_value=MIN_VALUE,
                       H=2, W=2):
    w_eff, b_eff, n_out = fold_conv_into_linear(conv_w, conv_b, lin_w, lin_b,
                                                H, W)
    K = w_eff.shape[0]
    min_value = float(min_value)

    @jax.jit
    def forward(x):
        B = x.shape[0]
        x_flat = x.reshape(B, K)                  # NCHW flatten order
        # Pad M to full sublanes (small B) or to a 256-row tile (large B).
        tm = M_TILE if B > M_TILE else max(M_MULT, _round_up(B, M_MULT))
        M = _round_up(max(B, tm), tm)
        x_pad = jnp.zeros((M, K), jnp.float32).at[:B].set(x_flat)
        call = _build_pallas_call(M, K, N_PAD, tm, min_value)
        out = call(x_pad, w_eff, b_eff)           # (M, 128)
        return out[:B, :n_out]                    # (B, 64)

    return forward


# ---------------------------------------------------------------------------
# Pure-JAX reference (mirrors the PyTorch module exactly)
# ---------------------------------------------------------------------------
def reference_forward(x, conv_w, conv_b, lin_w, lin_b, min_value=MIN_VALUE):
    xp = jnp.pad(x, ((0, 0), (0, 0), (1, 1), (1, 1)))
    v1 = jnp.einsum("bchw,oc->bohw", xp, conv_w[:, :, 0, 0]) + conv_b[
        None, :, None, None
    ]
    v2 = v1.reshape(x.shape[0], -1)
    v3 = v2 @ lin_w.T + lin_b
    return jnp.minimum(jnp.maximum(v3, min_value), 0.0)


# ---------------------------------------------------------------------------
if __name__ == "__main__":
    key = jax.random.PRNGKey(0)
    k_x, k_cw, k_cb, k_lw, k_lb = jax.random.split(key, 5)

    # Input consistent with Linear(128, 64): (B=2, C=3, H=2, W=2)
    x = jax.random.normal(k_x, (2, 3, 2, 2), dtype=jnp.float32)

    # Deterministic synthetic parameters (shapes match the PyTorch module).
    conv_w = jax.random.normal(k_cw, (8, 3, 1, 1), dtype=jnp.float32) * 0.2
    conv_b = jax.random.normal(k_cb, (8,), dtype=jnp.float32) * 0.1
    lin_w = jax.random.normal(k_lw, (64, 128), dtype=jnp.float32) * 0.05
    lin_b = jax.random.normal(k_lb, (64,), dtype=jnp.float32) * 0.1

    # Fold once; the returned closure's hot path is one pallas_call under jit.
    forward = make_model_forward(conv_w, conv_b, lin_w, lin_b, MIN_VALUE)

    out = forward(x)
    out = jax.block_until_ready(out)

    ref = reference_forward(x, conv_w, conv_b, lin_w, lin_b, MIN_VALUE)
    assert out.shape == (2, 64) and out.dtype == jnp.float32
    assert jnp.allclose(out, ref, atol=1e-5, rtol=1e-5), "mismatch vs reference"

    # Second call exercises the cached/jitted fast path (no retrace).
    out2 = jax.block_until_ready(forward(x))
    assert jnp.allclose(out2, ref, atol=1e-5, rtol=1e-5)

    print("KERNEL_OK")
</pallas_src>

<mosaic_0001>
module attributes {stable_mosaic.version = 11 : i64} {
  func.func @_fused_affine_clamp_kernel(%arg0: i32, %arg1: memref<8x12xf32, #tpu.memory_space<vmem>>, %arg2: memref<12x128xf32, #tpu.memory_space<vmem>>, %arg3: memref<1x128xf32, #tpu.memory_space<vmem>>, %arg4: memref<8x128xf32, #tpu.memory_space<vmem>>) attributes {dimension_semantics = [#tpu.dimension_semantics<parallel>], iteration_bounds = array<i64: 1>, scalar_prefetch = 0 : i64, scratch_operands = 0 : i64, tpu.core_type = #tpu.core_type<tc>, window_params = [{transform_indices = @transform_0, window_bounds = array<i64: 8, 12>}, {pipeline_mode = #tpu.pipeline_mode<synchronous>, transform_indices = @transform_1, window_bounds = array<i64: 12, 128>}, {pipeline_mode = #tpu.pipeline_mode<synchronous>, transform_indices = @transform_2, window_bounds = array<i64: 1, 128>}, {transform_indices = @transform_3, window_bounds = array<i64: 8, 128>}]} {
    %c0 = arith.constant 0 : index
    %c0_0 = arith.constant 0 : index
    %0 = vector.load %arg1[%c0, %c0_0] : memref<8x12xf32, #tpu.memory_space<vmem>>, vector<8x12xf32>
    %c0_1 = arith.constant 0 : index
    %c0_2 = arith.constant 0 : index
    %1 = vector.load %arg2[%c0_1, %c0_2] : memref<12x128xf32, #tpu.memory_space<vmem>>, vector<12x128xf32>
    %cst = arith.constant dense<0.000000e+00> : vector<8x128xf32>
    %2 = tpu.matmul %0, %1, %cst {dimension_numbers = #tpu.dot_dimension_numbers<[1], [0], [0], [1], [0, 0, 1, 1], [], []>} : vector<8x12xf32>, vector<12x128xf32>, vector<8x128xf32> -> vector<8x128xf32>
    %c0_3 = arith.constant 0 : index
    %c0_4 = arith.constant 0 : index
    %3 = vector.load %arg3[%c0_3, %c0_4] : memref<1x128xf32, #tpu.memory_space<vmem>>, vector<1x128xf32>
    %4 = vector.broadcast %3 : vector<1x128xf32> to vector<8x128xf32>
    %5 = arith.addf %2, %4 : vector<8x128xf32>
    %cst_5 = arith.constant -5.000000e-01 : f32
    %6 = vector.broadcast %cst_5 : f32 to vector<8x128xf32>
    %7 = arith.maximumf %5, %6 : vector<8x128xf32>
    %cst_6 = arith.constant 0.000000e+00 : f32
    %8 = vector.broadcast %cst_6 : f32 to vector<8x128xf32>
    %9 = arith.minimumf %7, %8 : vector<8x128xf32>
    %c0_7 = arith.constant 0 : index
    %c0_8 = arith.constant 0 : index
    %10 = vector.load %arg4[%c0_7, %c0_8] : memref<8x128xf32, #tpu.memory_space<vmem>>, vector<8x128xf32>
    tpu.vector_store %arg4[%c0_7, %c0_8], %9 {strides = array<i32>} : memref<8x128xf32, #tpu.memory_space<vmem>>, vector<8x128xf32>,
    return
  }
  func.func @transform_0(%arg0: i32) -> (i32, i32) {
    %c0_i32 = arith.constant 0 : i32
    %c0_i32_0 = arith.constant 0 : i32
    return %arg0, %c0_i32 : i32, i32
  }
  func.func @transform_1(%arg0: i32) -> (i32, i32) {
    %c0_i32 = arith.constant 0 : i32
    %c0_i32_0 = arith.constant 0 : i32
    %c0_i32_1 = arith.constant 0 : i32
    return %c0_i32, %c0_i32_0 : i32, i32
  }
  func.func @transform_2(%arg0: i32) -> (i32, i32) {
    %c0_i32 = arith.constant 0 : i32
    %c0_i32_0 = arith.constant 0 : i32
    %c0_i32_1 = arith.constant 0 : i32
    return %c0_i32, %c0_i32_0 : i32, i32
  }
  func.func @transform_3(%arg0: i32) -> (i32, i32) {
    %c0_i32 = arith.constant 0 : i32
    %c0_i32_0 = arith.constant 0 : i32
    return %arg0, %c0_i32 : i32, i32
  }
}

</mosaic_0001>

<bundles_post_ra>
// kernel: forward.1
= control target key start
LH: loop header
LB: loop body
LE: loop exit
PB: predicated region body
PF: predicated region fallthrough
CT: control target
= control target key end

     0   :  { %vm28_vm0 = vcmask 1043456   ;;  %v124_v0 = vmov 0.0   ;;  %vm125_vm1 = vmmov 0   ;;  %vm24_vm2 = vcmask 97280   ;;  %s161_s1 = inlined_call_operand.vmem [shape: f32[12,128], index: 1, kind: input, shape index: {}]   ;;  %s162_s0 = inlined_call_operand.vmem [shape: f32[8,12], index: 0, kind: input, shape index: {}]   ;;  %s163_s2 = inlined_call_operand.vmem [shape: f32[1,128], index: 2, kind: input, shape index: {}]   ;;  %s164_s3 = inlined_call_operand.vmem [shape: f32[8,128], index: 3, kind: output, shape index: {}]  }
   0x1   :  { %115 = vmatprep.subr.mxu0 %v124_v0  ;;  %v16_v1 = vld [vmem:[%s161_s1 + $0x8] sm:$0xf]  ;;  %v15_v2 = vld [vmem:[%s161_s1] sm:$0xff]  ;;  %119 = vmatprep.mubr.msk.f32.mxu0 %vm125_vm1, %v124_v0 }
   0x2   :  { %116 = vmatpush3.msk.msra.mxu0 %vm28_vm0, %v16_v1  ;;  %v14_v3 = vld [vmem:[%s162_s0] sm:$0xff] }
   0x3   :  { %117 = vmatprep.subr.mxu0 %v124_v0  ;;  %v109_v4 = vld [vmem:[%s163_s2] ss:$0 sm:$0xff] }
   0x4   :  { %118 = vmatpush3.msra.mxu0 %v15_v2 }
   0x5   :  { %120 = vmatmul.mubr.msk.f32.vlgmr.msra.gmra.mxu0 %vm24_vm2, %v14_v3 }
  0xc5   :  { %v98_v5 = vpop.f32.mrf.mxu0 }
  0xc6   :  { %v99_v6 = vadd.f32 %v109_v4, %v98_v5 }
  0xc7   :  { %v121_v7 = vpop.f32.mrf.mxu0 }
  0xc8   :  { %v102_v8 = vmax.f32 %v99_v6, -0.5 }
  0xca   :  { %v103_v9 = vmin.f32 %v102_v8, 0.0 }
  0xcc   :  { %104 = vst [vmem:[%s164_s3] sm:$0xff] %v103_v9 }

</bundles_post_ra>
